<compile_context>
chip_gen: v7x
topology: tpu7x:2x2x1
jax: 0.10.0
libtpu: 0.0.40
codegen_flags: <defaults>
</compile_context>

<pallas_src>
import functools

import jax
import jax.numpy as jnp
from jax.experimental import pallas as pl
from jax.experimental.pallas import tpu as pltpu


def _round_up(x, m):
    return (x + m - 1) // m * m


def _linear_dynamic_kernel(emb_ref, idx_ref, w_ref, out_ref, *, num_ops, dim):
    """One grid step: push (TM, dim) rows through all operators, then select.

    emb_ref: VMEM (TM, dim)            float
    idx_ref: VMEM (TM, 1)              int32 operator index per row
    w_ref  : VMEM (num_ops*dim, dim)   stacked linears; row o*dim+i == linears[o, i, :]
    out_ref: VMEM (TM, dim)
    """
    emb = emb_ref[...]                                   # (TM, dim)
    idx = idx_ref[...]                                   # (TM, 1) int32

    # y[r, o*dim + i] = sum_j linears[o, i, j] * emb[r, j] = (linears[o] @ emb[r])[i]
    y = jax.lax.dot_general(
        emb, w_ref[...],
        (((1,), (1,)), ((), ())),
        preferred_element_type=jnp.float32,
    )                                                    # (TM, num_ops*dim) f32

    acc = jnp.zeros(out_ref.shape, jnp.float32)
    for o in range(num_ops):                             # small, static unroll
        acc = acc + jnp.where(idx == o, y[:, o * dim:(o + 1) * dim], 0.0)

    out_ref[...] = acc.astype(out_ref.dtype)             # single dense block store


def linear_dynamic_operator(embeddings, operator_idxs, linears, *, rows_per_block=1024):
    """Applies per-vector linear operators selected by operator_idxs."""
    *lead, dim = embeddings.shape
    assert tuple(operator_idxs.shape) == tuple(lead), "operator_idxs must match leading dims"
    num_ops = linears.shape[0]
    assert linears.shape == (num_ops, dim, dim)

    emb_flat = embeddings.reshape(-1, dim)
    idx_col = operator_idxs.reshape(-1, 1).astype(jnp.int32)
    b = emb_flat.shape[0]

    # Row-block size: large for throughput, clamped + padded so any batch works.
    tm = min(_round_up(rows_per_block, 8), _round_up(b, 8))
    b_pad = _round_up(b, tm)
    if b_pad != b:
        emb_flat = jnp.pad(emb_flat, ((0, b_pad - b), (0, 0)))
        idx_col = jnp.pad(idx_col, ((0, b_pad - b), (0, 0)))

    # Stack all operator matrices into one (num_ops*dim, dim) operand (done once,
    # outside the kernel). The kernel contracts against its last axis, so the
    # matmul result is lane-dense (width num_ops*dim).
    w_stacked = linears.reshape(num_ops * dim, dim)

    grid = (b_pad // tm,)
    kernel = functools.partial(_linear_dynamic_kernel, num_ops=num_ops, dim=dim)

    out_flat = pl.pallas_call(
        kernel,
        out_shape=jax.ShapeDtypeStruct((b_pad, dim), embeddings.dtype),
        grid=grid,
        in_specs=[
            # embeddings: one (tm, dim) row block per grid step
            pl.BlockSpec((tm, dim), lambda i: (i, 0)),
            # per-row operator indices: (tm, 1) int32 block per grid step
            pl.BlockSpec((tm, 1), lambda i: (i, 0)),
            # stacked weights: full tensor, same block every step (VMEM resident)
            # TODO(synk): on v7x, pipeline_mode=pl.Buffered(1) would halve its footprint.
            pl.BlockSpec((num_ops * dim, dim), lambda i: (0, 0)),
        ],
        out_specs=pl.BlockSpec((tm, dim), lambda i: (i, 0)),
        compiler_params=pltpu.CompilerParams(
            dimension_semantics=("parallel",)),
    )(emb_flat, idx_col, w_stacked)

    if b_pad != b:
        out_flat = out_flat[:b]
    return out_flat.reshape(*lead, dim)


if __name__ == "__main__":
    key = jax.random.PRNGKey(0)
    dim, num_ops = 32, 4
    lead = (2, 8)  # arbitrary leading dims (flattened batch = 16)

    k_emb, k_idx, k_pert = jax.random.split(key, 3)
    embeddings = jax.random.normal(k_emb, (*lead, dim), dtype=jnp.float32)
    operator_idxs = jax.random.randint(k_idx, lead, 0, num_ops, dtype=jnp.int32)

    # Module __init__: torch.eye(dim).repeat(num_operations, 1, 1).
    # Add a small deterministic perturbation so the matvec path is nontrivial.
    linears = (
        jnp.tile(jnp.eye(dim, dtype=jnp.float32)[None], (num_ops, 1, 1))
        + 0.01 * jax.random.normal(k_pert, (num_ops, dim, dim), dtype=jnp.float32)
    )

    out = linear_dynamic_operator(embeddings, operator_idxs, linears)
    out = jax.block_until_ready(out)

    # Pure-JAX reference (matches torch.matmul(linears[idx], emb.unsqueeze(-1)).squeeze(-1))
    ref = jnp.einsum("...ij,...j->...i", linears[operator_idxs], embeddings)
    assert out.shape == embeddings.shape
    assert out.dtype == embeddings.dtype
    assert jnp.allclose(out, ref, atol=1e-5, rtol=1e-5)
    print("KERNEL_OK")
</pallas_src>

<mosaic_0001>
module attributes {stable_mosaic.version = 11 : i64} {
  func.func @_linear_dynamic_kernel(%arg0: i32, %arg1: memref<16x32xf32, #tpu.memory_space<vmem>>, %arg2: memref<16x1xi32, #tpu.memory_space<vmem>>, %arg3: memref<128x32xf32, #tpu.memory_space<vmem>>, %arg4: memref<16x32xf32, #tpu.memory_space<vmem>>) attributes {dimension_semantics = [#tpu.dimension_semantics<parallel>], iteration_bounds = array<i64: 1>, scalar_prefetch = 0 : i64, scratch_operands = 0 : i64, tpu.core_type = #tpu.core_type<tc>, window_params = [{transform_indices = @transform_0, window_bounds = array<i64: 16, 32>}, {transform_indices = @transform_1, window_bounds = array<i64: 16, 1>}, {pipeline_mode = #tpu.pipeline_mode<synchronous>, transform_indices = @transform_2, window_bounds = array<i64: 128, 32>}, {transform_indices = @transform_3, window_bounds = array<i64: 16, 32>}]} {
    %c0 = arith.constant 0 : index
    %c0_0 = arith.constant 0 : index
    %0 = vector.load %arg1[%c0, %c0_0] : memref<16x32xf32, #tpu.memory_space<vmem>>, vector<16x32xf32>
    %c0_1 = arith.constant 0 : index
    %c0_2 = arith.constant 0 : index
    %1 = vector.load %arg2[%c0_1, %c0_2] : memref<16x1xi32, #tpu.memory_space<vmem>>, vector<16x1xi32>
    %c0_3 = arith.constant 0 : index
    %c0_4 = arith.constant 0 : index
    %2 = vector.load %arg3[%c0_3, %c0_4] : memref<128x32xf32, #tpu.memory_space<vmem>>, vector<128x32xf32>
    %cst = arith.constant dense<0.000000e+00> : vector<16x128xf32>
    %3 = tpu.matmul %0, %2, %cst {dimension_numbers = #tpu.dot_dimension_numbers<[1], [1], [0], [0], [0, 0, 1, 0], [], []>} : vector<16x32xf32>, vector<128x32xf32>, vector<16x128xf32> -> vector<16x128xf32>
    %cst_5 = arith.constant 0.000000e+00 : f32
    %4 = vector.broadcast %cst_5 : f32 to vector<16x32xf32>
    %c0_i32 = arith.constant 0 : i32
    %5 = vector.broadcast %c0_i32 : i32 to vector<16x1xi32>
    %6 = arith.cmpi eq, %1, %5 : vector<16x1xi32>
    %7 = vector.extract_strided_slice %3 {offsets = [0, 0], sizes = [16, 32], strides = [1, 1]} : vector<16x128xf32> to vector<16x32xf32>
    %cst_6 = arith.constant 0.000000e+00 : f32
    %8 = vector.shape_cast %6 : vector<16x1xi1> to vector<16x1xi1>
    %9 = vector.broadcast %8 : vector<16x1xi1> to vector<16x32xi1>
    %10 = vector.broadcast %cst_6 : f32 to vector<16x32xf32>
    %11 = arith.select %9, %7, %10 : vector<16x32xi1>, vector<16x32xf32>
    %12 = arith.addf %4, %11 : vector<16x32xf32>
    %c1_i32 = arith.constant 1 : i32
    %13 = vector.broadcast %c1_i32 : i32 to vector<16x1xi32>
    %14 = arith.cmpi eq, %1, %13 : vector<16x1xi32>
    %15 = vector.extract_strided_slice %3 {offsets = [0, 32], sizes = [16, 32], strides = [1, 1]} : vector<16x128xf32> to vector<16x32xf32>
    %cst_7 = arith.constant 0.000000e+00 : f32
    %16 = vector.shape_cast %14 : vector<16x1xi1> to vector<16x1xi1>
    %17 = vector.broadcast %16 : vector<16x1xi1> to vector<16x32xi1>
    %18 = vector.broadcast %cst_7 : f32 to vector<16x32xf32>
    %19 = arith.select %17, %15, %18 : vector<16x32xi1>, vector<16x32xf32>
    %20 = arith.addf %12, %19 : vector<16x32xf32>
    %c2_i32 = arith.constant 2 : i32
    %21 = vector.broadcast %c2_i32 : i32 to vector<16x1xi32>
    %22 = arith.cmpi eq, %1, %21 : vector<16x1xi32>
    %23 = vector.extract_strided_slice %3 {offsets = [0, 64], sizes = [16, 32], strides = [1, 1]} : vector<16x128xf32> to vector<16x32xf32>
    %cst_8 = arith.constant 0.000000e+00 : f32
    %24 = vector.shape_cast %22 : vector<16x1xi1> to vector<16x1xi1>
    %25 = vector.broadcast %24 : vector<16x1xi1> to vector<16x32xi1>
    %26 = vector.broadcast %cst_8 : f32 to vector<16x32xf32>
    %27 = arith.select %25, %23, %26 : vector<16x32xi1>, vector<16x32xf32>
    %28 = arith.addf %20, %27 : vector<16x32xf32>
    %c3_i32 = arith.constant 3 : i32
    %29 = vector.broadcast %c3_i32 : i32 to vector<16x1xi32>
    %30 = arith.cmpi eq, %1, %29 : vector<16x1xi32>
    %31 = vector.extract_strided_slice %3 {offsets = [0, 96], sizes = [16, 32], strides = [1, 1]} : vector<16x128xf32> to vector<16x32xf32>
    %cst_9 = arith.constant 0.000000e+00 : f32
    %32 = vector.shape_cast %30 : vector<16x1xi1> to vector<16x1xi1>
    %33 = vector.broadcast %32 : vector<16x1xi1> to vector<16x32xi1>
    %34 = vector.broadcast %cst_9 : f32 to vector<16x32xf32>
    %35 = arith.select %33, %31, %34 : vector<16x32xi1>, vector<16x32xf32>
    %36 = arith.addf %28, %35 : vector<16x32xf32>
    %c0_10 = arith.constant 0 : index
    %c0_11 = arith.constant 0 : index
    %37 = vector.load %arg4[%c0_10, %c0_11] : memref<16x32xf32, #tpu.memory_space<vmem>>, vector<16x32xf32>
    tpu.vector_store %arg4[%c0_10, %c0_11], %36 {strides = array<i32>} : memref<16x32xf32, #tpu.memory_space<vmem>>, vector<16x32xf32>,
    return
  }
  func.func @transform_0(%arg0: i32) -> (i32, i32) {
    %c0_i32 = arith.constant 0 : i32
    %c0_i32_0 = arith.constant 0 : i32
    return %arg0, %c0_i32 : i32, i32
  }
  func.func @transform_1(%arg0: i32) -> (i32, i32) {
    %c0_i32 = arith.constant 0 : i32
    %c0_i32_0 = arith.constant 0 : i32
    return %arg0, %c0_i32 : i32, i32
  }
  func.func @transform_2(%arg0: i32) -> (i32, i32) {
    %c0_i32 = arith.constant 0 : i32
    %c0_i32_0 = arith.constant 0 : i32
    %c0_i32_1 = arith.constant 0 : i32
    return %c0_i32, %c0_i32_0 : i32, i32
  }
  func.func @transform_3(%arg0: i32) -> (i32, i32) {
    %c0_i32 = arith.constant 0 : i32
    %c0_i32_0 = arith.constant 0 : i32
    return %arg0, %c0_i32 : i32, i32
  }
}

</mosaic_0001>

<bundles_post_ra>
// kernel: tpu_custom_call.1
= control target key start
LH: loop header
LB: loop body
LE: loop exit
PB: predicated region body
PF: predicated region fallthrough
CT: control target
= control target key end

     0   :  { %vm35_vm0 = vcmask 261120   ;;  %v423_v6 = vmov 0   ;;  %s564_s0 = inlined_call_operand.vmem [shape: f32[16,32], index: 0, kind: input, shape index: {}]   ;;  %s565_s1 = inlined_call_operand.vmem [shape: s32[16,1], index: 1, kind: input, shape index: {}]   ;;  %s566_s2 = inlined_call_operand.vmem [shape: f32[128,32], index: 2, kind: input, shape index: {}]   ;;  %s567_s3 = inlined_call_operand.hbm [shape: f32[16,32], index: 3, kind: output, shape index: {}]  }
   0x1   :  { %v19_v0 = vld [vmem:[%s566_s2] sm:$0xff]  ;;  %v20_v1 = vld [vmem:[%s566_s2 + $0x8] sm:$0xff]  ;;  %v21_v2 = vld [vmem:[%s566_s2 + $0x10] sm:$0xff]  ;;  %397 = vset.pattern.permute.xlu0 %v423_v6  ;;  %398 = vset.pattern.permute.xlu1 %v423_v6 }
   0x2   :  { %v342_v3 = vpack.c.bf16 %v20_v1, %v19_v0  ;;  %vm461_vm1 = vmpackc.low %vm35_vm0, %vm35_vm0  ;;  %v22_v5 = vld [vmem:[%s566_s2 + $0x18] sm:$0xff]  ;;  %v23_v8 = vld [vmem:[%s566_s2 + $0x20] sm:$0xff] }
   0x3   :  { %v348_v7 = vpack.c.bf16 %v22_v5, %v21_v2  ;;  %v15_v9 = vld [vmem:[%s564_s0] sm:$0xff]  ;;  %v24_v10 = vld [vmem:[%s566_s2 + $0x28] sm:$0xff] }
   0x4   :  { %344 = vmatprep.subr.msk.bf16.mxu0 %vm461_vm1, %v342_v3  ;;  %339 = vmatprep.mubr.msk.f32.mxu0 %vm35_vm0, %v15_v9  ;;  %v17_v11 = vld [vmem:[%s565_s1] sm:$0xff]  ;;  %v18_v12 = vld [vmem:[%s565_s1 + $0x8] sm:$0xff] }
   0x5   :  { %347 = vmatpush3.bf16.xpose.msk.msra.mxu0 %vm461_vm1, %v342_v3  ;;  %vm181_vm2 = vcmp.eq.s32.totalorder %v17_v11, 1  ;;  %vm205_vm3 = vcmp.eq.s32.totalorder %v17_v11, 2  ;;  %vm182_vm4 = vcmp.eq.s32.totalorder %v18_v12, 1 }
   0x6   :  { %350 = vmatprep.subr.msk.bf16.mxu0 %vm461_vm1, %v348_v7 }
   0x7   :  { %8 = vsyncpa [#allocation3], 0  ;;  %v183_v13 = vsel %vm181_vm2, 1, %v423_v6  ;;  %v207_v14 = vsel %vm205_vm3, 1, %v423_v6  ;;  %vm206_vm5 = vcmp.eq.s32.totalorder %v18_v12, 2  ;;  %v354_v15 = vpack.c.bf16 %v24_v10, %v23_v8  ;;  %v25_v18 = vld [vmem:[%s566_s2 + $0x30] sm:$0xff] }
   0x8   :  { %186 = vperm.xlu0 %397, %v183_v13   ;;  %210 = vperm.xlu1 %398, %v207_v14   ;;  %v184_v16 = vsel %vm182_vm4, 1, %v423_v6  ;;  %v208_v17 = vsel %vm206_vm5, 1, %v423_v6  ;;  %vm229_vm6 = vcmp.eq.s32.totalorder %v17_v11, 3  ;;  %vm230_vm7 = vcmp.eq.s32.totalorder %v18_v12, 3  ;;  %v26_v19 = vld [vmem:[%s566_s2 + $0x38] sm:$0xff]  ;;  %v27_v25 = vld [vmem:[%s566_s2 + $0x40] sm:$0xff] }
   0x9   :  { %v231_v20 = vsel %vm229_vm6, 1, %v423_v6  ;;  %v232_v21 = vsel %vm230_vm7, 1, %v423_v6  ;;  %vm165_vm8 = vcmp.eq.s32.totalorder %v17_v11, 0  ;;  %vm166_vm9 = vcmp.eq.s32.totalorder %v18_v12, 0  ;;  %v28_v26 = vld [vmem:[%s566_s2 + $0x48] sm:$0xff]  ;;  %v29_v28 = vld [vmem:[%s566_s2 + $0x50] sm:$0xff] }
   0xa   :  { %v360_v22 = vpack.c.bf16 %v26_v19, %v25_v18  ;;  %v167_v23 = vsel %vm165_vm8, 1, %v423_v6  ;;  %v168_v24 = vsel %vm166_vm9, 1, %v423_v6  ;;  %v366_v27 = vpack.c.bf16 %v28_v26, %v27_v25  ;;  %v30_v29 = vld [vmem:[%s566_s2 + $0x58] sm:$0xff]  ;;  %v31_v31 = vld [vmem:[%s566_s2 + $0x60] sm:$0xff]  ;;  %v32_v32 = vld [vmem:[%s566_s2 + $0x68] sm:$0xff]  ;;  %s426_s24 = smov 32  }
   0xb   :  { %v372_v30 = vpack.c.bf16 %v30_v29, %v29_v28  ;;  %v378_v33 = vpack.c.bf16 %v32_v32, %v31_v31  ;;  %v33_v34 = vld [vmem:[%s566_s2 + $0x70] sm:$0xff]  ;;  %v34_v35 = vld [vmem:[%s566_s2 + $0x78] sm:$0xff]  ;;  %v16_v37 = vld [vmem:[%s564_s0 + $0x8] sm:$0xff]  ;;  %s424_s2 = smov 96   ;;  %s425_s0 = smov 64  }
   0xc   :  { %189 = vperm.xlu0 %397, %v184_v16   ;;  %213 = vperm.xlu1 %398, %v208_v17   ;;  %v384_v36 = vpack.c.bf16 %v34_v35, %v33_v34  ;;  %s427_s25 = smov [#allocation2]  }
   0xd   :  { %353 = vmatpush3.bf16.xpose.msk.msra.mxu0 %vm461_vm1, %v348_v7  ;;  %s260_s26 = sshll.u32 %s427_s25, 4  ;;  %s261_s26 = int_to_ptr.vmem [resolvable:$true] %s260_s26 }
   0xe   :  { %356 = vmatprep.subr.msk.bf16.mxu0 %vm461_vm1, %v354_v15  ;;  %s399_s27 = scalar_lea.vmem %s261_s26, 256  ;;  %p404_p1 = scmp.lt.s32.totalorder %s261_s26, %s261_s26 }
   0xf   :  { %p400_p0 = scmp.ne.s32.totalorder %s261_s26, %s399_s27  ;;  %p405_p2 = scmp.lt.s32.totalorder %s399_s27, %s399_s27 }
  0x10   :  { %234 = vperm.xlu0 %397, %v231_v20   ;;  %237 = vperm.xlu1 %398, %v232_v21  }
  0x11   :  { %p406_p3 = por %p405_p2, %p404_p1 }
  0x13   :  { %p407_p4 = pnand %p406_p3, %p400_p0 }
  0x14   :  { %170 = vperm.xlu0 %397, %v167_v23   ;;  %173 = vperm.xlu1 %398, %v168_v24  }
  0x15   :  { %359 = vmatpush3.bf16.xpose.msk.msra.mxu0 %vm461_vm1, %v354_v15 }
  0x16   :  { %362 = vmatprep.subr.msk.bf16.mxu0 %vm461_vm1, %v360_v22 }
  0x1d   :  { %365 = vmatpush3.bf16.xpose.msk.msra.mxu0 %vm461_vm1, %v360_v22 }
  0x1e   :  { %368 = vmatprep.subr.msk.bf16.mxu0 %vm461_vm1, %v366_v27 }
  0x25   :  { %371 = vmatpush3.bf16.xpose.msk.msra.mxu0 %vm461_vm1, %v366_v27 }
  0x26   :  { %374 = vmatprep.subr.msk.bf16.mxu0 %vm461_vm1, %v372_v30 }
  0x2d   :  { %377 = vmatpush3.bf16.xpose.msk.msra.mxu0 %vm461_vm1, %v372_v30 }
  0x2e   :  { %380 = vmatprep.subr.msk.bf16.mxu0 %vm461_vm1, %v378_v33 }
  0x35   :  { %383 = vmatpush3.bf16.xpose.msk.msra.mxu0 %vm461_vm1, %v378_v33 }
  0x36   :  { %386 = vmatprep.subr.msk.bf16.mxu0 %vm461_vm1, %v384_v36 }
  0x3d   :  { %389 = vmatpush3.bf16.xpose.msk.msra.mxu0 %vm461_vm1, %v384_v36 }
  0x44   :  { %340 = vmatmul.mubr.msk.f32.vlgmr.msra.gmra.mrb[0].mxu0 %vm35_vm0, %v16_v37 }
  0x87   :  { %v187_v38 = vpop.permute.xlu0 %186  ;;  %v211_v39 = vpop.permute.xlu1 %210 }
  0x88   :  { %vm191_vm11 = vcmp.eq.s32.totalorder %v187_v38, 1  ;;  %vm215_vm13 = vcmp.eq.s32.totalorder %v211_v39, 1 }
  0x8b   :  { %v190_v40 = vpop.permute.xlu0 %189  ;;  %v214_v41 = vpop.permute.xlu1 %213 }
  0x8c   :  { %vm192_vm10 = vcmp.eq.s32.totalorder %v190_v40, 1  ;;  %vm216_vm12 = vcmp.eq.s32.totalorder %v214_v41, 1 }
  0x8f   :  { %v238_v46 = vpop.permute.xlu1 %237  ;;  %v235_v49 = vpop.permute.xlu0 %234 }
  0x90   :  { %vm240_vm14 = vcmp.eq.s32.totalorder %v238_v46, 1  ;;  %vm239_vm15 = vcmp.eq.s32.totalorder %v235_v49, 1 }
  0x93   :  { %v174_v52 = vpop.permute.xlu1 %173  ;;  %v171_v53 = vpop.permute.xlu0 %170 }
  0x94   :  { %vm176_vm1 = vcmp.eq.s32.totalorder %v174_v52, 1  ;;  %vm175_vm2 = vcmp.eq.s32.totalorder %v171_v53, 1 }
 0x117   :  { %v341_v42 = vpop.f32.mrb[0].mxu0 }
 0x118   :  { %v156_v43 = vpop.f32.mrb[1].mxu0  ;;  %v194_v44 = vsel %vm192_vm10, %v341_v42, 0.0  ;;  %v218_v47 = vsel %vm216_vm12, %v341_v42, 0.0  ;;  %v242_v50 = vsel %vm240_vm14, %v341_v42, 0.0  ;;  %v178_v56 = vsel %vm176_vm1, %v341_v42, 0.0 }
 0x119   :  { %199 = vrot.lane.b32.xlu1 %v194_v44, %s424_s2  ;;  %v193_v45 = vsel %vm191_vm11, %v156_v43, 0.0  ;;  %v217_v48 = vsel %vm215_vm13, %v156_v43, 0.0  ;;  %v241_v51 = vsel %vm239_vm15, %v156_v43, 0.0  ;;  %v177_v59 = vsel %vm175_vm2, %v156_v43, 0.0 }
 0x11a   :  { %197 = vrot.lane.b32.xlu0 %v193_v45, %s424_s2 }
 0x11d   :  { %223 = vrot.lane.b32.xlu1 %v218_v47, %s425_s0 }
 0x11e   :  { %221 = vrot.lane.b32.xlu0 %v217_v48, %s425_s0 }
 0x121   :  { %247 = vrot.lane.b32.xlu1 %v242_v50, %s426_s24 }
 0x122   :  { %245 = vrot.lane.b32.xlu0 %v241_v51, %s426_s24 }
 0x18b   :  { %v200_v54 = vpop.permute.xlu1 %199 }
 0x18c   :  { %v198_v55 = vpop.permute.xlu0 %197  ;;  %v204_v58 = vadd.f32 %v200_v54, %v178_v56 }
 0x18d   :  { %v203_v61 = vadd.f32 %v198_v55, %v177_v59 }
 0x18f   :  { %v224_v57 = vpop.permute.xlu1 %223 }
 0x190   :  { %v222_v60 = vpop.permute.xlu0 %221  ;;  %v228_v62 = vadd.f32 %v224_v57, %v204_v58 }
 0x191   :  { %v227_v63 = vadd.f32 %v222_v60, %v203_v61 }
 0x193   :  { %v248_v0 = vpop.permute.xlu1 %247 }
 0x194   :  { %v252_v1 = vadd.f32 %v248_v0, %v228_v62  ;;  %v246_v2 = vpop.permute.xlu0 %245 }
 0x195   :  { %v251_v3 = vadd.f32 %v246_v2, %v227_v63 }
 0x196   :  { %254 = vst.msk [vmem:[#allocation2 + $0x8] sm:$0xff] %vm35_vm0, %v252_v1 }
 0x197   :  { %253 = vst.msk [vmem:[#allocation2] sm:$0xff] %vm35_vm0, %v251_v3 }
 0x198   :  { %410 = shalt.err (!%p407_p4)
}
 0x199   :  { %s411_s1 = scalar_lea.hbm %s567_s3, 256 }
 0x19a   :  { %p412_p5 = scmp.ne.s32.totalorder %s567_s3, %s411_s1  ;;  %p415_p6 = scmp.lt.u32.totalorder %s411_s1, %s567_s3 }
 0x19c   :  { %p417_p7 = pnand %p415_p6, %p412_p5 }
 0x19e   :  { %420 = shalt.err (!%p417_p7)
}
 0x19f   :  { %s428_s7 = smov 128   ;;  %s429_s8 = smov 8  }
 0x1a0   :  { %266 = dma.vmem_to_hbm [thread:$0]  %s261_s26, 256, %s567_s3, [#allocation3], %s428_s7, %s428_s7, %s429_s8  }
 0x1a1   :  { %421 = dma.done.wait [#allocation3], 256  }
 0x1a2   :  { %422 = vsyncadd [#allocation3], 4294967040 }
 0x1a3   :  { %270 = vsyncpa [#allocation3], 1 }

</bundles_post_ra>
